<compile_context>
chip_gen: v7x
topology: tpu7x:2x2x1
jax: 0.10.0
libtpu: 0.0.40
codegen_flags: <defaults>
</compile_context>

<pallas_src>
import functools

import jax
import jax.numpy as jnp
from jax.experimental import pallas as pl
from jax.experimental.pallas import tpu as pltpu


def actor_kernel(x_ref, w1_ref, b1_ref, w2_ref, b2_ref, w3_ref, b3_ref,
                 w4_ref, b4_ref, out_ref, *, max_action):
    # bf16 operands into the MXU, f32 accumulation, f32 elementwise epilogue.
    x = x_ref[...].astype(jnp.bfloat16)

    h = jnp.dot(x, w1_ref[...], preferred_element_type=jnp.float32) + b1_ref[...]
    h = jnp.maximum(h, 0.0)

    h = jnp.dot(h.astype(jnp.bfloat16), w2_ref[...],
                preferred_element_type=jnp.float32) + b2_ref[...]
    h = jnp.maximum(h, 0.0)

    h = jnp.dot(h.astype(jnp.bfloat16), w3_ref[...],
                preferred_element_type=jnp.float32) + b3_ref[...]
    h = jnp.maximum(h, 0.0)

    a = jnp.dot(h.astype(jnp.bfloat16), w4_ref[...],
                preferred_element_type=jnp.float32) + b4_ref[...]
    # tanh rides the EUP slot, the scalar scale rides a free VPU slot.
    out_ref[...] = (max_action * jnp.tanh(a)).astype(out_ref.dtype)


def _round_up(n, m):
    return ((n + m - 1) // m) * m


def prepare_params(raw_params, in_dim, act_dim):
    """One-time host-side conversion: pad K of w1 / N of w4 to lane-dense widths,
    cast weights to bf16, keep biases in f32."""
    w1, b1, w2, b2, w3, b3, w4, b4 = raw_params

    in_pad = _round_up(max(in_dim, 128), 128)
    out_pad = _round_up(max(act_dim, 128), 128)

    w1p = jnp.zeros((in_pad, w1.shape[1]), jnp.float32).at[:in_dim, :].set(w1)
    w4p = jnp.zeros((w4.shape[0], out_pad), jnp.float32).at[:, :act_dim].set(w4)
    b4p = jnp.zeros((1, out_pad), jnp.float32).at[:, :act_dim].set(b4)

    return (
        w1p.astype(jnp.bfloat16), b1.astype(jnp.float32),
        w2.astype(jnp.bfloat16), b2.astype(jnp.float32),
        w3.astype(jnp.bfloat16), b3.astype(jnp.float32),
        w4p.astype(jnp.bfloat16), b4p.astype(jnp.float32),
    )


def actor_forward(x, prepared_params, max_action, act_dim, *, block_b=512):
    w1, b1, w2, b2, w3, b3, w4, b4 = prepared_params
    batch, in_dim = x.shape
    in_pad = w1.shape[0]
    out_pad = w4.shape[1]

    # Pad batch to a multiple of 8 sublanes, then to a multiple of the batch tile.
    b8 = max(8, _round_up(batch, 8))
    tb = min(block_b, b8)
    b_pad = _round_up(b8, tb)

    x_p = jnp.zeros((b_pad, in_pad), jnp.float32).at[:batch, :in_dim].set(x)

    def full_spec(arr):
        rank = arr.ndim
        return pl.BlockSpec(arr.shape, lambda i, _r=rank: (0,) * _r)

    kernel = functools.partial(actor_kernel, max_action=float(max_action))

    grid = (b_pad // tb,)
    out = pl.pallas_call(
        kernel,
        out_shape=jax.ShapeDtypeStruct((b_pad, out_pad), jnp.float32),
        grid_spec=pl.GridSpec(
            grid=grid,
            in_specs=[
                pl.BlockSpec((tb, in_pad), lambda i: (i, 0)),   # x: streamed over batch
                full_spec(w1), full_spec(b1),                   # weights: VMEM-resident
                full_spec(w2), full_spec(b2),
                full_spec(w3), full_spec(b3),
                full_spec(w4), full_spec(b4),
            ],
            out_specs=pl.BlockSpec((tb, out_pad), lambda i: (i, 0)),
        ),
        compiler_params=pltpu.CompilerParams(
            dimension_semantics=("parallel",),
        ),
    )(x_p, w1, b1, w2, b2, w3, b3, w4, b4)

    return out[:batch, :act_dim]


def init_params(key, in_dim, hidden, act_dim):
    # Deterministic synthetic init (roughly matches PyTorch's U(-1/sqrt(fan_in), +...)).
    # Weights stored transposed w.r.t. PyTorch: (in_features, out_features).
    def linear(key, fan_in, fan_out):
        kw, kb = jax.random.split(key)
        bound = 1.0 / jnp.sqrt(fan_in)
        w = jax.random.uniform(kw, (fan_in, fan_out), jnp.float32, -bound, bound)
        b = jax.random.uniform(kb, (1, fan_out), jnp.float32, -bound, bound)
        return w, b

    k1, k2, k3, k4 = jax.random.split(key, 4)
    w1, b1 = linear(k1, in_dim, hidden)
    w2, b2 = linear(k2, hidden, hidden)
    w3, b3 = linear(k3, hidden, hidden)
    w4, b4 = linear(k4, hidden, act_dim)
    return (w1, b1, w2, b2, w3, b3, w4, b4)


if __name__ == "__main__":
    # env_params: obs=10, goal=3, action=4, action_max=1.0
    OBS, GOAL, ACTION, MAX_ACTION = 10, 3, 4, 1.0
    HIDDEN = 256
    BATCH = 2
    IN_DIM = OBS + GOAL

    key = jax.random.PRNGKey(0)
    kx, kp = jax.random.split(key)
    x = jax.random.normal(kx, (BATCH, IN_DIM), jnp.float32)
    raw_params = init_params(kp, IN_DIM, HIDDEN, ACTION)
    params = prepare_params(raw_params, IN_DIM, ACTION)

    out = actor_forward(x, params, MAX_ACTION, ACTION)
    jax.block_until_ready(out)

    # Pure-JAX f32 reference check (loosened tolerance for bf16 weights).
    w1, b1, w2, b2, w3, b3, w4, b4 = raw_params
    h = jnp.maximum(x @ w1 + b1, 0.0)
    h = jnp.maximum(h @ w2 + b2, 0.0)
    h = jnp.maximum(h @ w3 + b3, 0.0)
    ref = MAX_ACTION * jnp.tanh(h @ w4 + b4)

    assert out.shape == (BATCH, ACTION)
    assert jnp.allclose(out, ref, atol=3e-2), "mismatch vs reference"

    print("KERNEL_OK")
</pallas_src>

<mosaic_0001>
module attributes {stable_mosaic.version = 11 : i64} {
  func.func @actor_kernel(%arg0: i32, %arg1: memref<8x128xf32, #tpu.memory_space<vmem>>, %arg2: memref<128x256xbf16, #tpu.memory_space<vmem>>, %arg3: memref<1x256xf32, #tpu.memory_space<vmem>>, %arg4: memref<256x256xbf16, #tpu.memory_space<vmem>>, %arg5: memref<1x256xf32, #tpu.memory_space<vmem>>, %arg6: memref<256x256xbf16, #tpu.memory_space<vmem>>, %arg7: memref<1x256xf32, #tpu.memory_space<vmem>>, %arg8: memref<256x128xbf16, #tpu.memory_space<vmem>>, %arg9: memref<1x128xf32, #tpu.memory_space<vmem>>, %arg10: memref<8x128xf32, #tpu.memory_space<vmem>>) attributes {dimension_semantics = [#tpu.dimension_semantics<parallel>], iteration_bounds = array<i64: 1>, scalar_prefetch = 0 : i64, scratch_operands = 0 : i64, tpu.core_type = #tpu.core_type<tc>, window_params = [{transform_indices = @transform_0, window_bounds = array<i64: 8, 128>}, {pipeline_mode = #tpu.pipeline_mode<synchronous>, transform_indices = @transform_1, window_bounds = array<i64: 128, 256>}, {pipeline_mode = #tpu.pipeline_mode<synchronous>, transform_indices = @transform_2, window_bounds = array<i64: 1, 256>}, {pipeline_mode = #tpu.pipeline_mode<synchronous>, transform_indices = @transform_3, window_bounds = array<i64: 256, 256>}, {pipeline_mode = #tpu.pipeline_mode<synchronous>, transform_indices = @transform_4, window_bounds = array<i64: 1, 256>}, {pipeline_mode = #tpu.pipeline_mode<synchronous>, transform_indices = @transform_5, window_bounds = array<i64: 256, 256>}, {pipeline_mode = #tpu.pipeline_mode<synchronous>, transform_indices = @transform_6, window_bounds = array<i64: 1, 256>}, {pipeline_mode = #tpu.pipeline_mode<synchronous>, transform_indices = @transform_7, window_bounds = array<i64: 256, 128>}, {pipeline_mode = #tpu.pipeline_mode<synchronous>, transform_indices = @transform_8, window_bounds = array<i64: 1, 128>}, {transform_indices = @transform_9, window_bounds = array<i64: 8, 128>}]} {
    %c0 = arith.constant 0 : index
    %c0_0 = arith.constant 0 : index
    %0 = vector.load %arg1[%c0, %c0_0] : memref<8x128xf32, #tpu.memory_space<vmem>>, vector<8x128xf32>
    %1 = arith.truncf %0 : vector<8x128xf32> to vector<8x128xbf16>
    %c0_1 = arith.constant 0 : index
    %c0_2 = arith.constant 0 : index
    %2 = vector.load %arg2[%c0_1, %c0_2] : memref<128x256xbf16, #tpu.memory_space<vmem>>, vector<128x256xbf16>
    %cst = arith.constant dense<0.000000e+00> : vector<8x256xf32>
    %3 = tpu.matmul %1, %2, %cst {dimension_numbers = #tpu.dot_dimension_numbers<[1], [0], [0], [1], [0, 0, 1, 1], [], []>} : vector<8x128xbf16>, vector<128x256xbf16>, vector<8x256xf32> -> vector<8x256xf32>
    %c0_3 = arith.constant 0 : index
    %c0_4 = arith.constant 0 : index
    %4 = vector.load %arg3[%c0_3, %c0_4] : memref<1x256xf32, #tpu.memory_space<vmem>>, vector<1x256xf32>
    %5 = vector.broadcast %4 : vector<1x256xf32> to vector<8x256xf32>
    %6 = arith.addf %3, %5 : vector<8x256xf32>
    %cst_5 = arith.constant 0.000000e+00 : f32
    %7 = vector.broadcast %cst_5 : f32 to vector<8x256xf32>
    %8 = arith.maximumf %6, %7 : vector<8x256xf32>
    %9 = arith.truncf %8 : vector<8x256xf32> to vector<8x256xbf16>
    %c0_6 = arith.constant 0 : index
    %c0_7 = arith.constant 0 : index
    %10 = vector.load %arg4[%c0_6, %c0_7] : memref<256x256xbf16, #tpu.memory_space<vmem>>, vector<256x256xbf16>
    %cst_8 = arith.constant dense<0.000000e+00> : vector<8x256xf32>
    %11 = tpu.matmul %9, %10, %cst_8 {dimension_numbers = #tpu.dot_dimension_numbers<[1], [0], [0], [1], [0, 0, 1, 1], [], []>} : vector<8x256xbf16>, vector<256x256xbf16>, vector<8x256xf32> -> vector<8x256xf32>
    %c0_9 = arith.constant 0 : index
    %c0_10 = arith.constant 0 : index
    %12 = vector.load %arg5[%c0_9, %c0_10] : memref<1x256xf32, #tpu.memory_space<vmem>>, vector<1x256xf32>
    %13 = vector.broadcast %12 : vector<1x256xf32> to vector<8x256xf32>
    %14 = arith.addf %11, %13 : vector<8x256xf32>
    %cst_11 = arith.constant 0.000000e+00 : f32
    %15 = vector.broadcast %cst_11 : f32 to vector<8x256xf32>
    %16 = arith.maximumf %14, %15 : vector<8x256xf32>
    %17 = arith.truncf %16 : vector<8x256xf32> to vector<8x256xbf16>
    %c0_12 = arith.constant 0 : index
    %c0_13 = arith.constant 0 : index
    %18 = vector.load %arg6[%c0_12, %c0_13] : memref<256x256xbf16, #tpu.memory_space<vmem>>, vector<256x256xbf16>
    %cst_14 = arith.constant dense<0.000000e+00> : vector<8x256xf32>
    %19 = tpu.matmul %17, %18, %cst_14 {dimension_numbers = #tpu.dot_dimension_numbers<[1], [0], [0], [1], [0, 0, 1, 1], [], []>} : vector<8x256xbf16>, vector<256x256xbf16>, vector<8x256xf32> -> vector<8x256xf32>
    %c0_15 = arith.constant 0 : index
    %c0_16 = arith.constant 0 : index
    %20 = vector.load %arg7[%c0_15, %c0_16] : memref<1x256xf32, #tpu.memory_space<vmem>>, vector<1x256xf32>
    %21 = vector.broadcast %20 : vector<1x256xf32> to vector<8x256xf32>
    %22 = arith.addf %19, %21 : vector<8x256xf32>
    %cst_17 = arith.constant 0.000000e+00 : f32
    %23 = vector.broadcast %cst_17 : f32 to vector<8x256xf32>
    %24 = arith.maximumf %22, %23 : vector<8x256xf32>
    %25 = arith.truncf %24 : vector<8x256xf32> to vector<8x256xbf16>
    %c0_18 = arith.constant 0 : index
    %c0_19 = arith.constant 0 : index
    %26 = vector.load %arg8[%c0_18, %c0_19] : memref<256x128xbf16, #tpu.memory_space<vmem>>, vector<256x128xbf16>
    %cst_20 = arith.constant dense<0.000000e+00> : vector<8x128xf32>
    %27 = tpu.matmul %25, %26, %cst_20 {dimension_numbers = #tpu.dot_dimension_numbers<[1], [0], [0], [1], [0, 0, 1, 1], [], []>} : vector<8x256xbf16>, vector<256x128xbf16>, vector<8x128xf32> -> vector<8x128xf32>
    %c0_21 = arith.constant 0 : index
    %c0_22 = arith.constant 0 : index
    %28 = vector.load %arg9[%c0_21, %c0_22] : memref<1x128xf32, #tpu.memory_space<vmem>>, vector<1x128xf32>
    %29 = vector.broadcast %28 : vector<1x128xf32> to vector<8x128xf32>
    %30 = arith.addf %27, %29 : vector<8x128xf32>
    %31 = math.tanh %30 : vector<8x128xf32>
    %cst_23 = arith.constant 1.000000e+00 : f32
    %32 = vector.broadcast %cst_23 : f32 to vector<8x128xf32>
    %33 = arith.mulf %32, %31 : vector<8x128xf32>
    %c0_24 = arith.constant 0 : index
    %c0_25 = arith.constant 0 : index
    %34 = vector.load %arg10[%c0_24, %c0_25] : memref<8x128xf32, #tpu.memory_space<vmem>>, vector<8x128xf32>
    tpu.vector_store %arg10[%c0_24, %c0_25], %33 {strides = array<i32>} : memref<8x128xf32, #tpu.memory_space<vmem>>, vector<8x128xf32>,
    return
  }
  func.func @transform_0(%arg0: i32) -> (i32, i32) {
    %c0_i32 = arith.constant 0 : i32
    %c0_i32_0 = arith.constant 0 : i32
    return %arg0, %c0_i32 : i32, i32
  }
  func.func @transform_1(%arg0: i32) -> (i32, i32) {
    %c0_i32 = arith.constant 0 : i32
    %c0_i32_0 = arith.constant 0 : i32
    %c0_i32_1 = arith.constant 0 : i32
    return %c0_i32, %c0_i32_0 : i32, i32
  }
  func.func @transform_2(%arg0: i32) -> (i32, i32) {
    %c0_i32 = arith.constant 0 : i32
    %c0_i32_0 = arith.constant 0 : i32
    %c0_i32_1 = arith.constant 0 : i32
    return %c0_i32, %c0_i32_0 : i32, i32
  }
  func.func @transform_3(%arg0: i32) -> (i32, i32) {
    %c0_i32 = arith.constant 0 : i32
    %c0_i32_0 = arith.constant 0 : i32
    %c0_i32_1 = arith.constant 0 : i32
    return %c0_i32, %c0_i32_0 : i32, i32
  }
  func.func @transform_4(%arg0: i32) -> (i32, i32) {
    %c0_i32 = arith.constant 0 : i32
    %c0_i32_0 = arith.constant 0 : i32
    %c0_i32_1 = arith.constant 0 : i32
    return %c0_i32, %c0_i32_0 : i32, i32
  }
  func.func @transform_5(%arg0: i32) -> (i32, i32) {
    %c0_i32 = arith.constant 0 : i32
    %c0_i32_0 = arith.constant 0 : i32
    %c0_i32_1 = arith.constant 0 : i32
    return %c0_i32, %c0_i32_0 : i32, i32
  }
  func.func @transform_6(%arg0: i32) -> (i32, i32) {
    %c0_i32 = arith.constant 0 : i32
    %c0_i32_0 = arith.constant 0 : i32
    %c0_i32_1 = arith.constant 0 : i32
    return %c0_i32, %c0_i32_0 : i32, i32
  }
  func.func @transform_7(%arg0: i32) -> (i32, i32) {
    %c0_i32 = arith.constant 0 : i32
    %c0_i32_0 = arith.constant 0 : i32
    %c0_i32_1 = arith.constant 0 : i32
    return %c0_i32, %c0_i32_0 : i32, i32
  }
  func.func @transform_8(%arg0: i32) -> (i32, i32) {
    %c0_i32 = arith.constant 0 : i32
    %c0_i32_0 = arith.constant 0 : i32
    %c0_i32_1 = arith.constant 0 : i32
    return %c0_i32, %c0_i32_0 : i32, i32
  }
  func.func @transform_9(%arg0: i32) -> (i32, i32) {
    %c0_i32 = arith.constant 0 : i32
    %c0_i32_0 = arith.constant 0 : i32
    return %arg0, %c0_i32 : i32, i32
  }
}

</mosaic_0001>

<bundles_post_ra>
// kernel: tpu_custom_call.1
= control target key start
LH: loop header
LB: loop body
LE: loop exit
PB: predicated region body
PF: predicated region fallthrough
CT: control target
= control target key end

     0   :  { %14 = vsyncpa [#allocation3], 0  ;;  %s1519_s0 = inlined_call_operand.hbm [shape: f32[8,128], index: 0, kind: input, shape index: {}]   ;;  %s1520_s1 = inlined_call_operand.hbm [shape: bf16[128,256], index: 1, kind: input, shape index: {}]   ;;  %s1521_s2 = inlined_call_operand.vmem [shape: f32[1,256], index: 2, kind: input, shape index: {}]   ;;  %s1522_s3 = inlined_call_operand.hbm [shape: bf16[256,256], index: 3, kind: input, shape index: {}]   ;;  %s1523_s4 = inlined_call_operand.vmem [shape: f32[1,256], index: 4, kind: input, shape index: {}]   ;;  %s1524_s5 = inlined_call_operand.hbm [shape: bf16[256,256], index: 5, kind: input, shape index: {}]   ;;  %s1525_s6 = inlined_call_operand.vmem [shape: f32[1,256], index: 6, kind: input, shape index: {}]   ;;  %s1526_s7 = inlined_call_operand.hbm [shape: bf16[256,128], index: 7, kind: input, shape index: {}]   ;;  %s1527_s8 = inlined_call_operand.vmem [shape: f32[1,128], index: 8, kind: input, shape index: {}]   ;;  %s1528_s9 = inlined_call_operand.hbm [shape: f32[8,128], index: 9, kind: output, shape index: {}]  }
   0x1   :  { %15 = vsyncpa [#allocation6], 0 }
   0x2   :  { %16 = vsyncpa [#allocation9], 0 }
   0x3   :  { %17 = vsyncpa [#allocation4], 0  ;;  %s1355_s30 = smov [#allocation5]   ;;  %s1215_s13 = scalar_lea.hbm %s1520_s1, 2048 }
   0x4   :  { %s33_s10 = sshll.u32 %s1355_s30, 4  ;;  %p1216_p0 = scmp.ne.s32.totalorder %s1520_s1, %s1215_s13  ;;  %s34_s10 = int_to_ptr.vmem [resolvable:$true] %s33_s10 }
   0x5   :  { %p1219_p1 = scmp.lt.u32.totalorder %s1215_s13, %s1520_s1 }
   0x7   :  { %p1221_p2 = pnand %p1219_p1, %p1216_p0 }
   0x9   :  { %1224 = shalt.err (!%p1221_p2)
}
   0xa   :  { %s1225_s18 = scalar_lea.vmem %s34_s10, 2048  ;;  %p1230_p4 = scmp.lt.s32.totalorder %s34_s10, %s34_s10 }
   0xb   :  { %p1226_p3 = scmp.ne.s32.totalorder %s34_s10, %s1225_s18  ;;  %p1231_p5 = scmp.lt.s32.totalorder %s1225_s18, %s1225_s18 }
   0xd   :  { %p1232_p6 = por %p1231_p5, %p1230_p4 }
   0xf   :  { %p1233_p7 = pnand %p1232_p6, %p1226_p3 }
  0x11   :  { %1236 = shalt.err (!%p1233_p7)
}
  0x12   :  { %s1356_s19 = smov 128   ;;  %s1357_s20 = smov 8  }
  0x13   :  { %39 = dma.hbm_to_vmem [thread:$0]  %s1520_s1, 2048, %s34_s10, [#allocation6], %s1356_s19, %s1356_s19, %s1357_s20  }
  0x14   :  { %s1358_s23 = smov [#allocation8]   ;;  %s1359_s25 = smov [#allocation2]  }
  0x15   :  { %s61_s24 = sshll.u32 %s1358_s23, 4  ;;  %s24_s26 = sshll.u32 %s1359_s25, 4  ;;  %s62_s24 = int_to_ptr.vmem [resolvable:$true] %s61_s24  ;;  %s25_s26 = int_to_ptr.vmem [resolvable:$true] %s24_s26 }
  0x16   :  { %s1237_s29 = scalar_lea.hbm %s1524_s5, 4096 }
  0x17   :  { %p1238_p8 = scmp.ne.s32.totalorder %s1524_s5, %s1237_s29  ;;  %p1241_p9 = scmp.lt.u32.totalorder %s1237_s29, %s1524_s5 }
  0x19   :  { %p1243_p10 = pnand %p1241_p9, %p1238_p8 }
  0x1b   :  { %1246 = shalt.err (!%p1243_p10)
}
  0x1c   :  { %s1247_s1 = scalar_lea.vmem %s62_s24, 4096  ;;  %p1252_p12 = scmp.lt.s32.totalorder %s62_s24, %s62_s24 }
  0x1d   :  { %p1248_p11 = scmp.ne.s32.totalorder %s62_s24, %s1247_s1  ;;  %p1253_p13 = scmp.lt.s32.totalorder %s1247_s1, %s1247_s1 }
  0x1f   :  { %p1254_p0 = por %p1253_p13, %p1252_p12 }
  0x21   :  { %p1255_p1 = pnand %p1254_p0, %p1248_p11 }
  0x23   :  { %1258 = shalt.err (!%p1255_p1)
}
  0x24   :  { %67 = dma.hbm_to_vmem [thread:$0]  %s1524_s5, 4096, %s62_s24, [#allocation9], %s1356_s19, %s1356_s19, %s1357_s20  }
  0x25   :  { %s1259_s17 = scalar_lea.hbm %s1519_s0, 128 }
  0x26   :  { %p1260_p2 = scmp.ne.s32.totalorder %s1519_s0, %s1259_s17  ;;  %p1263_p3 = scmp.lt.u32.totalorder %s1259_s17, %s1519_s0 }
  0x28   :  { %p1265_p4 = pnand %p1263_p3, %p1260_p2 }
  0x2a   :  { %1268 = shalt.err (!%p1265_p4)
}
  0x2b   :  { %s1269_s25 = scalar_lea.vmem %s25_s26, 128  ;;  %p1274_p6 = scmp.lt.s32.totalorder %s25_s26, %s25_s26 }
  0x2c   :  { %p1270_p5 = scmp.ne.s32.totalorder %s25_s26, %s1269_s25  ;;  %p1275_p7 = scmp.lt.s32.totalorder %s1269_s25, %s1269_s25 }
  0x2e   :  { %p1276_p8 = por %p1275_p7, %p1274_p6 }
  0x30   :  { %p1277_p9 = pnand %p1276_p8, %p1270_p5 }
  0x32   :  { %1280 = shalt.err (!%p1277_p9)
}
  0x33   :  { %27 = dma.hbm_to_vmem [thread:$0]  %s1519_s0, 128, %s25_s26, [#allocation3]  }
  0x34   :  { %s1360_s27 = smov [#allocation7]   ;;  %s1361_s29 = smov [#allocation10]  }
  0x35   :  { %s47_s28 = sshll.u32 %s1360_s27, 4  ;;  %s75_s30 = sshll.u32 %s1361_s29, 4  ;;  %s48_s28 = int_to_ptr.vmem [resolvable:$true] %s47_s28  ;;  %s76_s30 = int_to_ptr.vmem [resolvable:$true] %s75_s30 }
  0x36   :  { %s1281_s13 = scalar_lea.hbm %s1522_s3, 4096 }
  0x37   :  { %p1282_p10 = scmp.ne.s32.totalorder %s1522_s3, %s1281_s13  ;;  %p1285_p11 = scmp.lt.u32.totalorder %s1281_s13, %s1522_s3 }
  0x39   :  { %p1287_p12 = pnand %p1285_p11, %p1282_p10 }
  0x3b   :  { %1290 = shalt.err (!%p1287_p12)
}
  0x3c   :  { %s1291_s0 = scalar_lea.vmem %s48_s28, 4096  ;;  %p1296_p0 = scmp.lt.s32.totalorder %s48_s28, %s48_s28 }
  0x3d   :  { %p1292_p13 = scmp.ne.s32.totalorder %s48_s28, %s1291_s0  ;;  %p1297_p1 = scmp.lt.s32.totalorder %s1291_s0, %s1291_s0 }
  0x3f   :  { %p1298_p2 = por %p1297_p1, %p1296_p0 }
  0x41   :  { %p1299_p3 = pnand %p1298_p2, %p1292_p13 }
  0x43   :  { %1302 = shalt.err (!%p1299_p3)
}
  0x44   :  { %53 = dma.hbm_to_vmem [thread:$0]  %s1522_s3, 4096, %s48_s28, [#allocation6], %s1356_s19, %s1356_s19, %s1357_s20  }
  0x45   :  { %s1303_s21 = scalar_lea.hbm %s1526_s7, 2048 }
  0x46   :  { %p1304_p4 = scmp.ne.s32.totalorder %s1526_s7, %s1303_s21  ;;  %p1307_p5 = scmp.lt.u32.totalorder %s1303_s21, %s1526_s7 }
  0x48   :  { %p1309_p6 = pnand %p1307_p5, %p1304_p4 }
  0x4a   :  { %1312 = shalt.err (!%p1309_p6)
}
  0x4b   :  { %s1313_s24 = scalar_lea.vmem %s76_s30, 2048  ;;  %p1318_p8 = scmp.lt.s32.totalorder %s76_s30, %s76_s30 }
  0x4c   :  { %p1314_p7 = scmp.ne.s32.totalorder %s76_s30, %s1313_s24  ;;  %p1319_p9 = scmp.lt.s32.totalorder %s1313_s24, %s1313_s24 }
  0x4e   :  { %p1320_p10 = por %p1319_p9, %p1318_p8 }
  0x50   :  { %p1321_p11 = pnand %p1320_p10, %p1314_p7 }
  0x52   :  { %1324 = shalt.err (!%p1321_p11)
}
  0x53   :  { %s1362_s3 = smov 64   ;;  %s1363_s19 = smov 4  }
  0x54   :  { %81 = dma.hbm_to_vmem [thread:$0]  %s1526_s7, 2048, %s76_s30, [#allocation9], %s1362_s3, %s1362_s3, %s1363_s19  }
  0x55   :  { %1347 = dma.done.wait [#allocation3], 128  }
  0x56   :  { %1348 = vsyncadd [#allocation3], 4294967168 }
  0x57   :  { %1349 = dma.done.wait [#allocation6], 6144  }
  0x58   :  { %1350 = vsyncadd [#allocation6], 4294961152 }
  0x59   :  { %1351 = dma.done.wait [#allocation9], 6144  }
  0x5a   :  { %1352 = vsyncadd [#allocation9], 4294961152  ;;  %v1364_v0 = vmov 0   ;;  %v1077_v1 = vld [vmem:[#allocation5 + $0x4] ss:$8 sps:$4 sm:$0xff]   ;;  %v100_v26 = vld [vmem:[#allocation2] sm:$0xff] }
  0x5b   :  { %242 = vmatprep.mubr.bf16.mxu0 %v1364_v0  ;;  %v1079_v2 = vld [vmem:[#allocation5] ss:$8 sps:$4 sm:$0xff]   ;;  %210 = vmatprep.subr.bf16.mxu0 %v1077_v1  ;;  %v1080_v3 = vld [vmem:[#allocation5 + $0x14] ss:$8 sps:$4 sm:$0xff]   ;;  %v1082_v4 = vld [vmem:[#allocation5 + $0x10] ss:$8 sps:$4 sm:$0xff]   ;;  %v101_v31 = vpack.c.bf16 %v100_v26, %v100_v26 }
  0x5c   :  { %211 = vmatpush1.bf16.msra.mxu0 %v1079_v2  ;;  %v1083_v5 = vld [vmem:[#allocation5 + $0x24] ss:$8 sps:$4 sm:$0xff]   ;;  %v1085_v6 = vld [vmem:[#allocation5 + $0x20] ss:$8 sps:$4 sm:$0xff]   ;;  %v1086_v7 = vld [vmem:[#allocation5 + $0x34] ss:$8 sps:$4 sm:$0xff]  }
  0x5d   :  { %212 = vmatprep.subr.bf16.mxu0 %v1080_v3  ;;  %v1088_v8 = vld [vmem:[#allocation5 + $0x30] ss:$8 sps:$4 sm:$0xff]   ;;  %v1089_v9 = vld [vmem:[#allocation5 + $0x44] ss:$8 sps:$4 sm:$0xff]   ;;  %v1103_v11 = vld [vmem:[#allocation7] ss:$8 sps:$4 sm:$0xff]  }
  0x5e   :  { %v1101_v10 = vld [vmem:[#allocation7 + $0x4] ss:$8 sps:$4 sm:$0xff]   ;;  %v1104_v12 = vld [vmem:[#allocation7 + $0x14] ss:$8 sps:$4 sm:$0xff]   ;;  %v1091_v13 = vld [vmem:[#allocation5 + $0x40] ss:$8 sps:$4 sm:$0xff]  }
  0x5f   :  { %459 = vmatprep.subr.bf16.mxu1 %v1101_v10  ;;  %v1106_v14 = vld [vmem:[#allocation7 + $0x10] ss:$8 sps:$4 sm:$0xff]   ;;  %v1107_v15 = vld [vmem:[#allocation7 + $0x24] ss:$8 sps:$4 sm:$0xff]   ;;  %v1092_v16 = vld [vmem:[#allocation5 + $0x54] ss:$8 sps:$4 sm:$0xff]  }
  0x60   :  { %213 = vmatpush1.bf16.msra.mxu0 %v1082_v4  ;;  %460 = vmatpush1.bf16.msra.mxu1 %v1103_v11  ;;  %v1094_v17 = vld [vmem:[#allocation5 + $0x50] ss:$8 sps:$4 sm:$0xff]   ;;  %v1109_v18 = vld [vmem:[#allocation7 + $0x20] ss:$8 sps:$4 sm:$0xff]   ;;  %v1110_v19 = vld [vmem:[#allocation7 + $0x34] ss:$8 sps:$4 sm:$0xff]  }
  0x61   :  { %214 = vmatprep.subr.bf16.mxu0 %v1083_v5  ;;  %461 = vmatprep.subr.bf16.mxu1 %v1104_v12  ;;  %v1095_v20 = vld [vmem:[#allocation5 + $0x64] ss:$8 sps:$4 sm:$0xff]   ;;  %v1097_v21 = vld [vmem:[#allocation5 + $0x60] ss:$8 sps:$4 sm:$0xff]   ;;  %v1112_v22 = vld [vmem:[#allocation7 + $0x30] ss:$8 sps:$4 sm:$0xff]  }
  0x62   :  { %v1113_v23 = vld [vmem:[#allocation7 + $0x44] ss:$8 sps:$4 sm:$0xff]   ;;  %v1098_v24 = vld [vmem:[#allocation5 + $0x74] ss:$8 sps:$4 sm:$0xff]   ;;  %v1100_v25 = vld [vmem:[#allocation5 + $0x70] ss:$8 sps:$4 sm:$0xff]  }
  0x63   :  { %v1115_v27 = vld [vmem:[#allocation7 + $0x40] ss:$8 sps:$4 sm:$0xff]   ;;  %v1116_v28 = vld [vmem:[#allocation7 + $0x54] ss:$8 sps:$4 sm:$0xff]   ;;  %v1118_v29 = vld [vmem:[#allocation7 + $0x50] ss:$8 sps:$4 sm:$0xff]  }
  0x64   :  { %215 = vmatpush1.bf16.msra.mxu0 %v1085_v6  ;;  %462 = vmatpush1.bf16.msra.mxu1 %v1106_v14  ;;  %v1119_v30 = vld [vmem:[#allocation7 + $0x64] ss:$8 sps:$4 sm:$0xff]   ;;  %v1121_v32 = vld [vmem:[#allocation7 + $0x60] ss:$8 sps:$4 sm:$0xff]   ;;  %v1122_v33 = vld [vmem:[#allocation7 + $0x74] ss:$8 sps:$4 sm:$0xff]  }
  0x65   :  { %216 = vmatprep.subr.bf16.mxu0 %v1086_v7  ;;  %463 = vmatprep.subr.bf16.mxu1 %v1107_v15  ;;  %v1124_v34 = vld [vmem:[#allocation7 + $0x70] ss:$8 sps:$4 sm:$0xff]   ;;  %v1125_v35 = vld [vmem:[#allocation7 + $0x84] ss:$8 sps:$4 sm:$0xff]   ;;  %v1127_v36 = vld [vmem:[#allocation7 + $0x80] ss:$8 sps:$4 sm:$0xff]   ;;  %v120_v15 = vlaneseq }
  0x66   :  { %v1128_v37 = vld [vmem:[#allocation7 + $0x94] ss:$8 sps:$4 sm:$0xff]   ;;  %v1130_v38 = vld [vmem:[#allocation7 + $0x90] ss:$8 sps:$4 sm:$0xff]   ;;  %v1131_v39 = vld [vmem:[#allocation7 + $0xa4] ss:$8 sps:$4 sm:$0xff]  }
  0x67   :  { %v1133_v40 = vld [vmem:[#allocation7 + $0xa0] ss:$8 sps:$4 sm:$0xff]   ;;  %v1134_v41 = vld [vmem:[#allocation7 + $0xb4] ss:$8 sps:$4 sm:$0xff]   ;;  %v1136_v42 = vld [vmem:[#allocation7 + $0xb0] ss:$8 sps:$4 sm:$0xff]  }
  0x68   :  { %217 = vmatpush1.bf16.msra.mxu0 %v1088_v8  ;;  %464 = vmatpush1.bf16.msra.mxu1 %v1109_v18  ;;  %v1137_v43 = vld [vmem:[#allocation7 + $0xc4] ss:$8 sps:$4 sm:$0xff]   ;;  %v1139_v44 = vld [vmem:[#allocation7 + $0xc0] ss:$8 sps:$4 sm:$0xff]   ;;  %v1140_v45 = vld [vmem:[#allocation7 + $0xd4] ss:$8 sps:$4 sm:$0xff]  }
  0x69   :  { %218 = vmatprep.subr.bf16.mxu0 %v1089_v9  ;;  %465 = vmatprep.subr.bf16.mxu1 %v1110_v19  ;;  %v1142_v46 = vld [vmem:[#allocation7 + $0xd0] ss:$8 sps:$4 sm:$0xff]   ;;  %v1143_v47 = vld [vmem:[#allocation7 + $0xe4] ss:$8 sps:$4 sm:$0xff]   ;;  %v1145_v48 = vld [vmem:[#allocation7 + $0xe0] ss:$8 sps:$4 sm:$0xff]  }
  0x6a   :  { %v1146_v49 = vld [vmem:[#allocation7 + $0xf4] ss:$8 sps:$4 sm:$0xff]   ;;  %v1148_v50 = vld [vmem:[#allocation7 + $0xf0] ss:$8 sps:$4 sm:$0xff]   ;;  %v1149_v51 = vld [vmem:[#allocation8] ss:$8 sps:$4 sm:$0xff]  }
  0x6b   :  { %v1151_v52 = vld [vmem:[#allocation8 + $0x4] ss:$8 sps:$4 sm:$0xff]   ;;  %v1154_v53 = vld [vmem:[#allocation8 + $0x14] ss:$8 sps:$4 sm:$0xff]   ;;  %v1152_v54 = vld [vmem:[#allocation8 + $0x10] ss:$8 sps:$4 sm:$0xff]  }
  0x6c   :  { %219 = vmatpush1.bf16.msra.mxu0 %v1091_v13  ;;  %466 = vmatpush1.bf16.msra.mxu1 %v1112_v22  ;;  %v1157_v55 = vld [vmem:[#allocation8 + $0x24] ss:$8 sps:$4 sm:$0xff]   ;;  %v1155_v56 = vld [vmem:[#allocation8 + $0x20] ss:$8 sps:$4 sm:$0xff]   ;;  %v1160_v57 = vld [vmem:[#allocation8 + $0x34] ss:$8 sps:$4 sm:$0xff]  }
  0x6d   :  { %220 = vmatprep.subr.bf16.mxu0 %v1092_v16  ;;  %467 = vmatprep.subr.bf16.mxu1 %v1113_v23  ;;  %v1158_v58 = vld [vmem:[#allocation8 + $0x30] ss:$8 sps:$4 sm:$0xff]   ;;  %v1163_v59 = vld [vmem:[#allocation8 + $0x44] ss:$8 sps:$4 sm:$0xff]   ;;  %v1161_v60 = vld [vmem:[#allocation8 + $0x40] ss:$8 sps:$4 sm:$0xff]  }
  0x6e   :  { %v1166_v61 = vld [vmem:[#allocation8 + $0x54] ss:$8 sps:$4 sm:$0xff]   ;;  %v1164_v62 = vld [vmem:[#allocation8 + $0x50] ss:$8 sps:$4 sm:$0xff]   ;;  %v1169_v63 = vld [vmem:[#allocation8 + $0x64] ss:$8 sps:$4 sm:$0xff]  }
  0x6f   :  { %v1167_v0 = vld [vmem:[#allocation8 + $0x60] ss:$8 sps:$4 sm:$0xff]   ;;  %v1172_v1 = vld [vmem:[#allocation8 + $0x74] ss:$8 sps:$4 sm:$0xff]   ;;  %v1170_v2 = vld [vmem:[#allocation8 + $0x70] ss:$8 sps:$4 sm:$0xff]  }
  0x70   :  { %221 = vmatpush1.bf16.msra.mxu0 %v1094_v17  ;;  %468 = vmatpush1.bf16.msra.mxu1 %v1115_v27  ;;  %v1175_v3 = vld [vmem:[#allocation8 + $0x84] ss:$8 sps:$4 sm:$0xff]   ;;  %v1173_v4 = vld [vmem:[#allocation8 + $0x80] ss:$8 sps:$4 sm:$0xff]   ;;  %v1178_v5 = vld [vmem:[#allocation8 + $0x94] ss:$8 sps:$4 sm:$0xff]  }
  0x71   :  { %222 = vmatprep.subr.bf16.mxu0 %v1095_v20  ;;  %469 = vmatprep.subr.bf16.mxu1 %v1116_v28  ;;  %v1176_v6 = vld [vmem:[#allocation8 + $0x90] ss:$8 sps:$4 sm:$0xff]   ;;  %v1181_v7 = vld [vmem:[#allocation8 + $0xa4] ss:$8 sps:$4 sm:$0xff]   ;;  %v1179_v8 = vld [vmem:[#allocation8 + $0xa0] ss:$8 sps:$4 sm:$0xff]  }
  0x72   :  { %v1184_v9 = vld [vmem:[#allocation8 + $0xb4] ss:$8 sps:$4 sm:$0xff]   ;;  %v1182_v10 = vld [vmem:[#allocation8 + $0xb0] ss:$8 sps:$4 sm:$0xff]   ;;  %v1187_v11 = vld [vmem:[#allocation8 + $0xc4] ss:$8 sps:$4 sm:$0xff]  }
  0x73   :  { %v1185_v12 = vld [vmem:[#allocation8 + $0xc0] ss:$8 sps:$4 sm:$0xff]   ;;  %v1190_v13 = vld [vmem:[#allocation8 + $0xd4] ss:$8 sps:$4 sm:$0xff]   ;;  %v1188_v14 = vld [vmem:[#allocation8 + $0xd0] ss:$8 sps:$4 sm:$0xff]  }
  0x74   :  { %223 = vmatpush1.bf16.msra.mxu0 %v1097_v21  ;;  %470 = vmatpush1.bf16.msra.mxu1 %v1118_v29  ;;  %v121_v16 = vshrl.u32 %v120_v15, 7  ;;  %v118_v18 = vld [vmem:[%s1521_s2] sm:$0x3] }
  0x75   :  { %224 = vmatprep.subr.bf16.mxu0 %v1098_v24  ;;  %471 = vmatprep.subr.bf16.mxu1 %v1119_v30  ;;  %v1027_v15 = vld [vmem:[%s1527_s8] ss:$0 sm:$0xff] }
  0x76   :  { %v1485_v17 = vsub.s32 0, %v121_v16  ;;  %v1490_v19 = vsub.s32 1, %v121_v16 }
  0x78   :  { %225 = vmatpush1.bf16.msra.mxu0 %v1100_v25  ;;  %472 = vmatpush1.bf16.msra.mxu1 %v1121_v32  ;;  %v123_v20 = vrot.slane %v118_v18, %v1485_v17  ;;  %v127_v21 = vrot.slane %v118_v18, %v1490_v19  ;;  %v1193_v32 = vld [vmem:[#allocation8 + $0xe4] ss:$8 sps:$4 sm:$0xff]  }
  0x79   :  { %473 = vmatprep.subr.bf16.mxu1 %v1122_v33  ;;  %708 = vmatprep.subr.bf16.mxu0 %v1151_v52  ;;  %v1191_v33 = vld [vmem:[#allocation8 + $0xe0] ss:$8 sps:$4 sm:$0xff]  }
  0x7b   :  { %243 = vmatmul.mubr.bf16.vlgmr.msra.gmra.mrb[0].mxu0 %v101_v31 }
  0x7c   :  { %474 = vmatpush1.bf16.msra.mxu1 %v1124_v34  ;;  %709 = vmatpush1.bf16.msra.mxu0 %v1149_v51  ;;  %v1196_v34 = vld [vmem:[#allocation8 + $0xf4] ss:$8 sps:$4 sm:$0xff]  }
  0x7d   :  { %475 = vmatprep.subr.bf16.mxu1 %v1125_v35  ;;  %710 = vmatprep.subr.bf16.mxu0 %v1154_v53  ;;  %v1194_v35 = vld [vmem:[#allocation8 + $0xf0] ss:$8 sps:$4 sm:$0xff]  }
  0x80   :  { %476 = vmatpush1.bf16.msra.mxu1 %v1127_v36  ;;  %711 = vmatpush1.bf16.msra.mxu0 %v1152_v54  ;;  %v1197_v36 = vld [vmem:[#allocation10 + $0x40] sm:$0xff]  }
  0x81   :  { %477 = vmatprep.subr.bf16.mxu1 %v1128_v37  ;;  %712 = vmatprep.subr.bf16.mxu0 %v1157_v55  ;;  %v1198_v37 = vld [vmem:[#allocation10] sm:$0xff]  }
  0x84   :  { %478 = vmatpush1.bf16.msra.mxu1 %v1130_v38  ;;  %713 = vmatpush1.bf16.msra.mxu0 %v1155_v56  ;;  %v1199_v38 = vld [vmem:[#allocation10 + $0x48] sm:$0xff]  }
  0x85   :  { %479 = vmatprep.subr.bf16.mxu1 %v1131_v39  ;;  %714 = vmatprep.subr.bf16.mxu0 %v1160_v57  ;;  %v1200_v39 = vld [vmem:[#allocation10 + $0x8] sm:$0xff]  }
  0x88   :  { %480 = vmatpush1.bf16.msra.mxu1 %v1133_v40  ;;  %715 = vmatpush1.bf16.msra.mxu0 %v1158_v58  ;;  %v1201_v40 = vld [vmem:[#allocation10 + $0x50] sm:$0xff]  }
  0x89   :  { %481 = vmatprep.subr.bf16.mxu1 %v1134_v41  ;;  %716 = vmatprep.subr.bf16.mxu0 %v1163_v59  ;;  %v1202_v41 = vld [vmem:[#allocation10 + $0x10] sm:$0xff]  }
  0x8c   :  { %482 = vmatpush1.bf16.msra.mxu1 %v1136_v42  ;;  %717 = vmatpush1.bf16.msra.mxu0 %v1161_v60  ;;  %v1203_v42 = vld [vmem:[#allocation10 + $0x58] sm:$0xff]  }
  0x8d   :  { %483 = vmatprep.subr.bf16.mxu1 %v1137_v43  ;;  %718 = vmatprep.subr.bf16.mxu0 %v1166_v61  ;;  %v1204_v43 = vld [vmem:[#allocation10 + $0x18] sm:$0xff]   ;;  %v1209_v61 = vld [vmem:[#allocation10 + $0x70] sm:$0xff]  }
  0x90   :  { %484 = vmatpush1.bf16.msra.mxu1 %v1139_v44  ;;  %719 = vmatpush1.bf16.msra.mxu0 %v1164_v62  ;;  %v1205_v44 = vld [vmem:[#allocation10 + $0x60] sm:$0xff]   ;;  %v1210_v62 = vld [vmem:[#allocation10 + $0x30] sm:$0xff]  }
  0x91   :  { %485 = vmatprep.subr.bf16.mxu1 %v1140_v45  ;;  %720 = vmatprep.subr.bf16.mxu0 %v1169_v63  ;;  %v1206_v45 = vld [vmem:[#allocation10 + $0x20] sm:$0xff]   ;;  %v1211_v63 = vld [vmem:[#allocation10 + $0x78] sm:$0xff]  }
  0x94   :  { %486 = vmatpush1.bf16.msra.mxu1 %v1142_v46  ;;  %721 = vmatpush1.bf16.msra.mxu0 %v1167_v0  ;;  %v1207_v46 = vld [vmem:[#allocation10 + $0x68] sm:$0xff]   ;;  %v1212_v0 = vld [vmem:[#allocation10 + $0x38] sm:$0xff]  }
  0x95   :  { %487 = vmatprep.subr.bf16.mxu1 %v1143_v47  ;;  %722 = vmatprep.subr.bf16.mxu0 %v1172_v1  ;;  %v1208_v47 = vld [vmem:[#allocation10 + $0x28] sm:$0xff]   ;;  %v536_v1 = vld [vmem:[%s1525_s6] sm:$0x3]  ;;  %s1365_s6 = smov [#allocation11]  }
  0x96   :  { %s936_s13 = sshll.u32 %s1365_s6, 4  ;;  %s937_s13 = int_to_ptr.vmem [resolvable:$true] %s936_s13 }
  0x97   :  { %s1325_s1 = scalar_lea.vmem %s937_s13, 128  ;;  %p1330_p13 = scmp.lt.s32.totalorder %s937_s13, %s937_s13 }
  0x98   :  { %488 = vmatpush1.bf16.msra.mxu1 %v1145_v48  ;;  %723 = vmatpush1.bf16.msra.mxu0 %v1170_v2  ;;  %v287_v48 = vld [vmem:[%s1523_s4] sm:$0x3]  ;;  %v541_v2 = vrot.slane %v536_v1, %v1485_v17  ;;  %p1326_p12 = scmp.ne.s32.totalorder %s937_s13, %s1325_s1  ;;  %p1331_p0 = scmp.lt.s32.totalorder %s1325_s1, %s1325_s1 }
  0x99   :  { %489 = vmatprep.subr.bf16.mxu1 %v1146_v49  ;;  %724 = vmatprep.subr.bf16.mxu0 %v1175_v3  ;;  %v292_v49 = vrot.slane %v287_v48, %v1485_v17  ;;  %v545_v3 = vrot.slane %v536_v1, %v1490_v19 }
  0x9a   :  { %p1332_p1 = por %p1331_p0, %p1330_p13 }
  0x9c   :  { %490 = vmatpush1.bf16.msra.mxu1 %v1148_v50  ;;  %725 = vmatpush1.bf16.msra.mxu0 %v1173_v4  ;;  %v296_v50 = vrot.slane %v287_v48, %v1490_v19  ;;  %p1333_p2 = pnand %p1332_p1, %p1326_p12 }
  0x9d   :  { %726 = vmatprep.subr.bf16.mxu0 %v1178_v5  ;;  %1044 = vmatprep.subr.bf16.mxu1 %v1197_v36 }
  0xa0   :  { %727 = vmatpush1.bf16.msra.mxu0 %v1176_v6 }
  0xa1   :  { %728 = vmatprep.subr.bf16.mxu0 %v1181_v7 }
  0xa4   :  { %729 = vmatpush1.bf16.msra.mxu0 %v1179_v8 }
  0xa5   :  { %730 = vmatprep.subr.bf16.mxu0 %v1184_v9 }
  0xa8   :  { %731 = vmatpush1.bf16.msra.mxu0 %v1182_v10 }
  0xa9   :  { %732 = vmatprep.subr.bf16.mxu0 %v1187_v11 }
  0xac   :  { %733 = vmatpush1.bf16.msra.mxu0 %v1185_v12 }
  0xad   :  { %734 = vmatprep.subr.bf16.mxu0 %v1190_v13 }
  0xb0   :  { %735 = vmatpush1.bf16.msra.mxu0 %v1188_v14 }
  0xb1   :  { %736 = vmatprep.subr.bf16.mxu0 %v1193_v32 }
  0xb4   :  { %737 = vmatpush1.bf16.msra.mxu0 %v1191_v33 }
  0xb5   :  { %738 = vmatprep.subr.bf16.mxu0 %v1196_v34 }
  0xb8   :  { %739 = vmatpush1.bf16.msra.mxu0 %v1194_v35 }
 0x14e   :  { %v244_v22 = vpop.f32.mrb[0].mxu0 }
 0x14f   :  { %v245_v23 = vadd.f32 %v244_v22, %v123_v20  ;;  %v246_v24 = vpop.f32.mrb[1].mxu0 }
 0x150   :  { %v247_v25 = vadd.f32 %v246_v24, %v127_v21  ;;  %v248_v26 = vpop.f32.mrb[2].mxu0 }
 0x151   :  { %v251_v27 = vmax.f32 %v245_v23, 0.0  ;;  %v249_v28 = vpop.f32.mrb[3].mxu0 }
 0x152   :  { %v252_v29 = vmax.f32 %v247_v25, 0.0 }
 0x153   :  { %v253_v31 = vpack.c.bf16 %v251_v27, %v251_v27 }
 0x154   :  { %v254_v30 = vpack.c.bf16 %v252_v29, %v252_v29 }
 0x156   :  { %491 = vmatprep.mubr.bf16.mxu1 %v254_v30 }
 0x157   :  { %492 = vmatmul.mubr.bf16.vlgmr.msra.gmra.mrb[0].mxu1 %v253_v31 }
 0x158   :  { %1045 = vmatpush3.bf16.msra.mxu1 %v1198_v37 }
 0x159   :  { %1046 = vmatprep.subr.bf16.mxu1 %v1199_v38 }
 0x15c   :  { %1047 = vmatpush3.bf16.msra.mxu1 %v1200_v39 }
 0x15d   :  { %1048 = vmatprep.subr.bf16.mxu1 %v1201_v40 }
 0x160   :  { %1049 = vmatpush3.bf16.msra.mxu1 %v1202_v41 }
 0x161   :  { %1050 = vmatprep.subr.bf16.mxu1 %v1203_v42 }
 0x164   :  { %1051 = vmatpush3.bf16.msra.mxu1 %v1204_v43 }
 0x165   :  { %1052 = vmatprep.subr.bf16.mxu1 %v1205_v44 }
 0x168   :  { %1053 = vmatpush3.bf16.msra.mxu1 %v1206_v45 }
 0x169   :  { %1054 = vmatprep.subr.bf16.mxu1 %v1207_v46 }
 0x16c   :  { %1055 = vmatpush3.bf16.msra.mxu1 %v1208_v47 }
 0x16d   :  { %1056 = vmatprep.subr.bf16.mxu1 %v1209_v61 }
 0x170   :  { %1057 = vmatpush3.bf16.msra.mxu1 %v1210_v62 }
 0x171   :  { %1058 = vmatprep.subr.bf16.mxu1 %v1211_v63 }
 0x174   :  { %1059 = vmatpush3.bf16.msra.mxu1 %v1212_v0 }
 0x22a   :  { %v493_v51 = vpop.f32.mrb[0].mxu1 }
 0x22b   :  { %v494_v52 = vadd.f32 %v493_v51, %v292_v49  ;;  %v495_v53 = vpop.f32.mrb[1].mxu1 }
 0x22c   :  { %v496_v54 = vadd.f32 %v495_v53, %v296_v50  ;;  %v497_v55 = vpop.f32.mrb[2].mxu1 }
 0x22d   :  { %v500_v56 = vmax.f32 %v494_v52, 0.0  ;;  %v498_v57 = vpop.f32.mrb[3].mxu1 }
 0x22e   :  { %v501_v58 = vmax.f32 %v496_v54, 0.0 }
 0x22f   :  { %v502_v60 = vpack.c.bf16 %v500_v56, %v500_v56 }
 0x230   :  { %v503_v59 = vpack.c.bf16 %v501_v58, %v501_v58 }
 0x232   :  { %740 = vmatprep.mubr.bf16.mxu0 %v503_v59 }
 0x233   :  { %741 = vmatmul.mubr.bf16.vlgmr.msra.gmra.mrb[4].mxu0 %v502_v60 }
 0x306   :  { %v742_v4 = vpop.f32.mrb[4].mxu0 }
 0x307   :  { %v743_v5 = vadd.f32 %v742_v4, %v541_v2  ;;  %v744_v6 = vpop.f32.mrb[5].mxu0 }
 0x308   :  { %v745_v7 = vadd.f32 %v744_v6, %v545_v3  ;;  %v746_v8 = vpop.f32.mrb[6].mxu0 }
 0x309   :  { %v749_v9 = vmax.f32 %v743_v5, 0.0  ;;  %v747_v10 = vpop.f32.mrb[7].mxu0 }
 0x30a   :  { %v750_v11 = vmax.f32 %v745_v7, 0.0 }
 0x30b   :  { %v751_v13 = vpack.c.bf16 %v749_v9, %v749_v9 }
 0x30c   :  { %v752_v12 = vpack.c.bf16 %v750_v11, %v750_v11 }
 0x30e   :  { %920 = vmatprep.mubr.bf16.mxu1 %v752_v12 }
 0x30f   :  { %921 = vmatmul.mubr.bf16.vlgmr.msra.gmra.mrb[4].mxu1 %v751_v13 }
 0x3e2   :  { %v1060_v14 = vpop.f32.mrb[4].mxu1 }
 0x3e3   :  { %v1061_v16 = vpop.f32.mrb[5].mxu1 }
 0x3e4   :  { %v1062_v17 = vadd.f32 %v1061_v16, %v1060_v14  ;;  %v1063_v18 = vpop.f32.mrb[6].mxu1 }
 0x3e5   :  { %v1064_v19 = vpop.f32.mrb[7].mxu1 }
 0x3e6   :  { %v923_v20 = vadd.f32 %v1062_v17, %v1027_v15 }
 0x3e8   :  { %1213 = vtanh.f32 %v923_v20 }
 0x3f2   :  { %v1214_v21 = vpop.eup %1213 }
 0x3f3   :  { %929 = vst [vmem:[#allocation11] sm:$0xff] %v1214_v21 }
 0x3f4   :  { %1336 = shalt.err (!%p1333_p2)
}
 0x3f5   :  { %s1337_s14 = scalar_lea.hbm %s1528_s9, 128 }
 0x3f6   :  { %p1338_p3 = scmp.ne.s32.totalorder %s1528_s9, %s1337_s14  ;;  %p1341_p4 = scmp.lt.u32.totalorder %s1337_s14, %s1528_s9 }
 0x3f8   :  { %p1343_p5 = pnand %p1341_p4, %p1338_p3 }
 0x3fa   :  { %1346 = shalt.err (!%p1343_p5)
}
 0x3fb   :  { %939 = dma.vmem_to_hbm [thread:$0]  %s937_s13, 128, %s1528_s9, [#allocation4]  }
 0x3fc   :  { %1353 = dma.done.wait [#allocation4], 128  }
 0x3fd   :  { %1354 = vsyncadd [#allocation4], 4294967168 }
 0x3fe   :  { %943 = vsyncpa [#allocation3], 1 }
 0x3ff   :  { %944 = vsyncpa [#allocation6], 1 }
 0x400   :  { %945 = vsyncpa [#allocation9], 1 }
 0x401   :  { %946 = vsyncpa [#allocation4], 1 }

</bundles_post_ra>
